<compile_context>
chip_gen: v7x
topology: tpu7x:2x2x1
jax: 0.10.0
libtpu: 0.0.40
codegen_flags: <defaults>
</compile_context>

<pallas_src>
import jax
import jax.numpy as jnp
from jax import lax
from jax.experimental import pallas as pl
from jax.experimental.pallas import tpu as pltpu


# --------------------------------------------------------------------------- #
# generation-aware configuration
# --------------------------------------------------------------------------- #
_ON_TPU = jax.default_backend() == "tpu"


def _device_kind():
    try:
        return jax.devices()[0].device_kind.lower()
    except Exception:
        return ""


def _vmem_budget_bytes():
    # ~3/4 of physical VMEM: 96 MiB on 128-MiB v5e/v6e, 48 MiB on 64-MiB v7x.
    # Fall back to a v6e-class assumption when no TPU (e.g. interpret mode).
    try:
        cap = pltpu.get_tpu_info().vmem_capacity_bytes
    except Exception:
        cap = 128 * 1024 * 1024
    return int(cap * 3 // 4)


_DEVICE_KIND = _device_kind()
_VMEM_BUDGET_BYTES = _vmem_budget_bytes()
_IS_V5E = ("v5 lite" in _DEVICE_KIND or "v5e" in _DEVICE_KIND
           or "v5lite" in _DEVICE_KIND)
_NUM_TENSORCORES = 2 if "v7" in _DEVICE_KIND else 1      # v7x: 2 TCs/chip
_MIN_GRID_STEPS = 2 if _NUM_TENSORCORES >= 2 else 1

# Matmul-input / inter-block activation dtype: bf16 on TPU (f32 accumulation),
# f32 elsewhere (the CPU dot thunk does not support BF16xBF16=F32).
_COMPUTE_DTYPE = jnp.bfloat16 if _ON_TPU else jnp.float32
_ACT_DTYPE = _COMPUTE_DTYPE
# GELU in bf16 only where the VPU/EUP supports it (v6e/v7x); f32 on v5e / CPU.
_GELU_DTYPE = _COMPUTE_DTYPE if (_ON_TPU and not _IS_V5E) else jnp.float32
# Constant (grid-invariant) inputs never re-DMA -> single buffer is enough.
_SINGLE_BUFFER_CONSTS = _ON_TPU


# --------------------------------------------------------------------------- #
# small helpers
# --------------------------------------------------------------------------- #
def _layernorm(x, gamma, beta, eps=1e-5):
    """LayerNorm over the last (channel) axis in f32 (torch.nn.LayerNorm(dim))."""
    mean = jnp.mean(x, axis=-1, keepdims=True)
    var = jnp.mean((x - mean) * (x - mean), axis=-1, keepdims=True)
    return (x - mean) * lax.rsqrt(var + eps) * gamma + beta


def _gelu(x):
    # tanh-approx GELU (EUP-friendly). torch.nn.GELU default is the erf form.
    # TODO(synk): switch to exact erf GELU if bit-level parity with torch is needed.
    return jax.nn.gelu(x, approximate=True)


def _round_up(n, m):
    return ((n + m - 1) // m) * m


def _pick_block_batch(B, per_sample_bytes, resident_bytes, *, min_steps=1):
    """Largest batch tile TB such that:
       * TB divides B and is either B itself or a multiple of 8
         (keeps the (8,128) second-minor BlockSpec constraint satisfied),
       * the per-step VMEM working set fits the generation-aware budget,
       * the grid has >= min_steps steps (2 only on dual-TensorCore v7x).
    Degrades gracefully (never raises) if the budget cannot be met."""
    budget = _VMEM_BUDGET_BYTES - resident_bytes - (2 << 20)   # slack for temps
    cands = sorted({B} | {d for d in range(8, B, 8) if B % d == 0}, reverse=True)
    fitting = [tb for tb in cands if tb * per_sample_bytes <= budget]
    for tb in fitting:                       # largest tile that also reaches min_steps
        if B // tb >= min_steps:
            return tb
    if fitting:                              # cannot reach min_steps: largest fitting
        return fitting[0]
    return cands[-1]                         # nothing fits the budget: smallest legal


def _const_spec(shape):
    """BlockSpec for a grid-invariant input; single-buffered on TPU (it never
    re-DMAs, so double-buffering is pure VMEM waste — biggest win on v7x)."""
    index_map = lambda *_: (0,) * len(shape)
    if _SINGLE_BUFFER_CONSTS:
        try:
            return pl.BlockSpec(shape, index_map, pipeline_mode=pl.Buffered(1))
        except Exception:
            pass
    return pl.BlockSpec(shape, index_map)


def extract_patches(x, patch_size):
    """(B, C, H, W) -> (num_patch, B, patch_size*patch_size*C).

    Pure layout rearrangement (equivalent to Conv2d(kernel=stride=patch_size)
    with the embed weight stored in matching (ph, pw, C) order); this is data
    movement, not compute, so it is left to XLA rather than a kernel. The
    (patch, batch, feature) layout lets the mixer kernels run token mixing as
    one merged matmul with lane width TB*D."""
    B, C, H, W = x.shape
    gh, gw = H // patch_size, W // patch_size
    p = x.reshape(B, C, gh, patch_size, gw, patch_size)
    p = p.transpose(2, 4, 0, 3, 5, 1)                  # (gh, gw, B, ph, pw, C)
    return p.reshape(gh * gw, B, patch_size * patch_size * C)


# --------------------------------------------------------------------------- #
# patch embedding kernel
# --------------------------------------------------------------------------- #
def patch_embed_kernel(p_ref, w_ref, b_ref, o_ref):
    N, TB, P = p_ref.shape
    D = w_ref.shape[1]
    p = p_ref[...].astype(w_ref.dtype).reshape(N * TB, P)      # merged MXU M
    y = jnp.dot(p, w_ref[...], preferred_element_type=jnp.float32) + b_ref[...]
    o_ref[...] = y.reshape(N, TB, D).astype(o_ref.dtype)


def patch_embed(patches, w, b):
    """patches (N, B, P) -> (N, B, D). P is zero-padded up to a multiple of 128
    (embed_w rows padded with zeros to match) so the contraction dim and its
    DMA are lane-dense."""
    N, B, P = patches.shape
    D = w.shape[1]
    P_pad = _round_up(P, 128)
    if P_pad != P:
        patches = jnp.pad(patches, ((0, 0), (0, 0), (0, P_pad - P)))
        w = jnp.pad(w, ((0, P_pad - P), (0, 0)))

    pbytes = patches.dtype.itemsize
    abytes = jnp.dtype(_ACT_DTYPE).itemsize
    wbuf = 1 if _SINGLE_BUFFER_CONSTS else 2
    per_sample = N * (2 * pbytes * P_pad + 2 * abytes * D + 4 * D)
    resident = wbuf * (w.dtype.itemsize * P_pad * D + 4 * D)
    tb = _pick_block_batch(B, per_sample, resident, min_steps=_MIN_GRID_STEPS)

    return pl.pallas_call(
        patch_embed_kernel,
        out_shape=jax.ShapeDtypeStruct((N, B, D), _ACT_DTYPE),
        grid_spec=pltpu.PrefetchScalarGridSpec(
            num_scalar_prefetch=0,
            grid=(B // tb,),
            in_specs=[
                pl.BlockSpec((N, tb, P_pad), lambda i: (0, i, 0)),
                _const_spec((P_pad, D)),
                _const_spec((1, D)),
            ],
            out_specs=pl.BlockSpec((N, tb, D), lambda i: (0, i, 0)),
        ),
        compiler_params=pltpu.CompilerParams(
            dimension_semantics=("parallel",),
            vmem_limit_bytes=_VMEM_BUDGET_BYTES),
    )(patches, w, b)


# --------------------------------------------------------------------------- #
# mixer block kernel (the main kernel)
# --------------------------------------------------------------------------- #
def mixer_block_kernel(
    x_ref,
    ln1_g_ref, ln1_b_ref,
    tw1_ref, tb1_ref, tw2_ref, tb2_ref,
    ln2_g_ref, ln2_b_ref,
    cw1_ref, cb1_ref, cw2_ref, cb2_ref,
    o_ref,
):
    N, TB, D = x_ref.shape
    cdt = tw1_ref.dtype                      # matmul-input dtype; acc stays f32
    gdt = _GELU_DTYPE
    contract0 = (((0,), (0,)), ((), ()))     # contract dim 0 of both operands

    x = x_ref[...].astype(jnp.float32)                          # (N, TB, D)

    # ---- token mixing: one merged matmul over all TB samples -----------------
    # Present the block as (N, TB*D): dot_general(tw1, y2) contracts the patch
    # axis directly, producing (T, TB*D); the second token matmul lands straight
    # back in residual layout.  No per-sample unroll, no transposes, bounded
    # live ranges, MXU lane width = TB*D.
    y = _layernorm(x, ln1_g_ref[...], ln1_b_ref[...])
    y2 = y.reshape(N, TB * D).astype(cdt)
    h = lax.dot_general(tw1_ref[...], y2, contract0,
                        preferred_element_type=jnp.float32)     # (T, TB*D)
    h = _gelu((h + tb1_ref[...]).astype(gdt)).astype(cdt)       # bias (T, 1)
    t = lax.dot_general(tw2_ref[...], h, contract0,
                        preferred_element_type=jnp.float32)     # (N, TB*D)
    x = x + (t + tb2_ref[...]).reshape(N, TB, D)                # bias (N, 1), residual

    # ---- channel mixing: merged (N*TB, D) slab --------------------------------
    y = _layernorm(x, ln2_g_ref[...], ln2_b_ref[...])
    y2 = y.reshape(N * TB, D).astype(cdt)
    h = jnp.dot(y2, cw1_ref[...], preferred_element_type=jnp.float32) + cb1_ref[...]
    h = _gelu(h.astype(gdt)).astype(cdt)
    c = jnp.dot(h, cw2_ref[...], preferred_element_type=jnp.float32) + cb2_ref[...]
    o_ref[...] = (x + c.reshape(N, TB, D)).astype(o_ref.dtype)


def mixer_block(x, p):
    N, B, D = x.shape
    T = p["token_w1"].shape[1]
    C = p["chan_w1"].shape[1]
    wbytes = p["token_w1"].dtype.itemsize
    abytes = x.dtype.itemsize
    wbuf = 1 if _SINGLE_BUFFER_CONSTS else 2

    # f32 in-kernel working set + pipelined activation in/out blocks, per sample.
    per_sample = 4 * N * (6 * D + C) + 4 * T * D + 2 * 2 * abytes * N * D
    resident = wbuf * (wbytes * 2 * (N * T + D * C) + 4 * (4 * D + 2 * C + T + N))
    tb = _pick_block_batch(B, per_sample, resident, min_steps=_MIN_GRID_STEPS)

    cost = pl.CostEstimate(
        flops=int(4 * B * N * D * (T + C)),
        transcendentals=int(B * (D * T + N * C)),
        bytes_accessed=int(4 * abytes * B * N * D
                           + 2 * wbytes * (N * T + D * C) * (B // tb)),
    )

    return pl.pallas_call(
        mixer_block_kernel,
        out_shape=jax.ShapeDtypeStruct((N, B, D), x.dtype),
        grid_spec=pltpu.PrefetchScalarGridSpec(
            num_scalar_prefetch=0,
            grid=(B // tb,),
            in_specs=[
                pl.BlockSpec((N, tb, D), lambda i: (0, i, 0)),   # x
                _const_spec((1, D)), _const_spec((1, D)),        # ln1 gamma, beta
                _const_spec((N, T)), _const_spec((T, 1)),        # token mlp w1, b1
                _const_spec((T, N)), _const_spec((N, 1)),        # token mlp w2, b2
                _const_spec((1, D)), _const_spec((1, D)),        # ln2 gamma, beta
                _const_spec((D, C)), _const_spec((1, C)),        # channel mlp w1, b1
                _const_spec((C, D)), _const_spec((1, D)),        # channel mlp w2, b2
            ],
            out_specs=pl.BlockSpec((N, tb, D), lambda i: (0, i, 0)),
        ),
        compiler_params=pltpu.CompilerParams(
            dimension_semantics=("parallel",),
            vmem_limit_bytes=_VMEM_BUDGET_BYTES),
        cost_estimate=cost,
    )(
        x,
        p["ln1_gamma"], p["ln1_beta"],
        p["token_w1"], p["token_b1"], p["token_w2"], p["token_b2"],
        p["ln2_gamma"], p["ln2_beta"],
        p["chan_w1"], p["chan_b1"], p["chan_w2"], p["chan_b2"],
    )


# --------------------------------------------------------------------------- #
# head kernel: final LayerNorm -> mean pool over patches -> classifier
# --------------------------------------------------------------------------- #
def mixer_head_kernel(x_ref, g_ref, b_ref, w_ref, hb_ref, o_ref):
    x = x_ref[...].astype(jnp.float32)                           # (N, TB, D)
    y = _layernorm(x, g_ref[...], b_ref[...])
    pooled = jnp.mean(y, axis=0)                                 # (TB, D) token mean
    logits = jnp.dot(pooled.astype(w_ref.dtype), w_ref[...],
                     preferred_element_type=jnp.float32) + hb_ref[...]
    # num_classes is usually << 128, so this store is lane-masked; the head is a
    # negligible fraction of the model, so that's acceptable.
    o_ref[...] = logits.astype(o_ref.dtype)


def mixer_head(x, gamma, beta, w, b):
    N, B, D = x.shape
    nc = w.shape[1]
    abytes = x.dtype.itemsize
    wbuf = 1 if _SINGLE_BUFFER_CONSTS else 2
    per_sample = N * (2 * abytes * D + 8 * D)
    resident = wbuf * (w.dtype.itemsize * D * nc + 4 * (2 * D + nc))
    tb = _pick_block_batch(B, per_sample, resident, min_steps=_MIN_GRID_STEPS)

    return pl.pallas_call(
        mixer_head_kernel,
        out_shape=jax.ShapeDtypeStruct((B, nc), jnp.float32),
        grid_spec=pltpu.PrefetchScalarGridSpec(
            num_scalar_prefetch=0,
            grid=(B // tb,),
            in_specs=[
                pl.BlockSpec((N, tb, D), lambda i: (0, i, 0)),
                _const_spec((1, D)), _const_spec((1, D)),
                _const_spec((D, nc)), _const_spec((1, nc)),
            ],
            out_specs=pl.BlockSpec((tb, nc), lambda i: (i, 0)),
        ),
        compiler_params=pltpu.CompilerParams(
            dimension_semantics=("parallel",),
            vmem_limit_bytes=_VMEM_BUDGET_BYTES),
    )(x, gamma, beta, w, b)


# --------------------------------------------------------------------------- #
# full model forward + params
# --------------------------------------------------------------------------- #
def mlp_mixer_forward(x, params, patch_size):
    # TODO(synk): fuse several mixer blocks into one pallas_call (activation
    # resident in VMEM, per-block weights streamed with emit_pipeline) to remove
    # the inter-block HBM round trip entirely for deep models.
    patches = extract_patches(x, patch_size)                     # (N, B, P)
    h = patch_embed(patches, params["embed_w"], params["embed_b"])
    for blk in params["blocks"]:
        h = mixer_block(h, blk)
    return mixer_head(h, params["head_ln_gamma"], params["head_ln_beta"],
                      params["head_w"], params["head_b"])


def init_mlp_mixer_params(key, in_channels, dim, num_classes, patch_size, image_size,
                          depth, tokens_mlp_dim, channels_mlp_dim,
                          weight_dtype=_COMPUTE_DTYPE):
    # TODO(synk): optional fp8 (v7x) / int8 (v6e) channel-MLP weights for extra
    # MXU throughput and halved resident weight VMEM (needs accuracy validation).
    num_patch = (image_size // patch_size) ** 2
    patch_dim = in_channels * patch_size * patch_size
    keys = iter(jax.random.split(key, 4 + 8 * depth))

    def dense(fan_in, fan_out):
        s = 1.0 / (fan_in ** 0.5)
        return jax.random.uniform(next(keys), (fan_in, fan_out), jnp.float32,
                                  -s, s).astype(weight_dtype)

    def bias(shape, fan_in):
        s = 1.0 / (fan_in ** 0.5)
        return jax.random.uniform(next(keys), shape, jnp.float32, -s, s)

    embed_w = dense(patch_dim, dim)
    embed_b = bias((1, dim), patch_dim)

    def block():
        return {
            "ln1_gamma": jnp.ones((1, dim), jnp.float32),
            "ln1_beta": jnp.zeros((1, dim), jnp.float32),
            "token_w1": dense(num_patch, tokens_mlp_dim),
            "token_b1": bias((tokens_mlp_dim, 1), num_patch),    # (T,1): bcast over D
            "token_w2": dense(tokens_mlp_dim, num_patch),
            "token_b2": bias((num_patch, 1), tokens_mlp_dim),    # (N,1): bcast over D
            "ln2_gamma": jnp.ones((1, dim), jnp.float32),
            "ln2_beta": jnp.zeros((1, dim), jnp.float32),
            "chan_w1": dense(dim, channels_mlp_dim),
            "chan_b1": bias((1, channels_mlp_dim), dim),
            "chan_w2": dense(channels_mlp_dim, dim),
            "chan_b2": bias((1, dim), channels_mlp_dim),
        }

    blocks = [block() for _ in range(depth)]
    return {
        "embed_w": embed_w, "embed_b": embed_b,
        "blocks": blocks,
        "head_ln_gamma": jnp.ones((1, dim), jnp.float32),
        "head_ln_beta": jnp.zeros((1, dim), jnp.float32),
        "head_w": dense(dim, num_classes),
        "head_b": bias((1, num_classes), dim),
    }


# --------------------------------------------------------------------------- #
# pure-JAX references (precision-matched: same dtypes / cast points, f32 acc)
# References work in the standard (B, N, D) layout.
# --------------------------------------------------------------------------- #
def patch_embed_ref(patches_bnp, w, b):
    y = jnp.einsum("bnp,pd->bnd", patches_bnp.astype(w.dtype), w,
                   preferred_element_type=jnp.float32) + b
    return y.astype(_ACT_DTYPE)


def mixer_block_ref(x, p):
    cdt = p["token_w1"].dtype
    xf = x.astype(jnp.float32)
    y = _layernorm(xf, p["ln1_gamma"], p["ln1_beta"]).astype(cdt)
    h = jnp.einsum("bnd,nt->btd", y, p["token_w1"],
                   preferred_element_type=jnp.float32) + p["token_b1"]
    h = _gelu(h.astype(_GELU_DTYPE)).astype(cdt)
    t = jnp.einsum("btd,tn->bnd", h, p["token_w2"],
                   preferred_element_type=jnp.float32) + p["token_b2"]
    xf = xf + t
    y = _layernorm(xf, p["ln2_gamma"], p["ln2_beta"]).astype(cdt)
    h = jnp.einsum("bnd,dc->bnc", y, p["chan_w1"],
                   preferred_element_type=jnp.float32) + p["chan_b1"]
    h = _gelu(h.astype(_GELU_DTYPE)).astype(cdt)
    c = jnp.einsum("bnc,cd->bnd", h, p["chan_w2"],
                   preferred_element_type=jnp.float32) + p["chan_b2"]
    return (xf + c).astype(_ACT_DTYPE)


def mixer_head_ref(x, g, bt, w, b):
    y = _layernorm(x.astype(jnp.float32), g, bt)
    pooled = jnp.mean(y, axis=1)
    return jnp.dot(pooled.astype(w.dtype), w,
                   preferred_element_type=jnp.float32) + b


def mlp_mixer_ref(x, params, patch_size):
    patches = jnp.transpose(extract_patches(x, patch_size), (1, 0, 2))   # (B, N, P)
    h = patch_embed_ref(patches, params["embed_w"], params["embed_b"])
    for blk in params["blocks"]:
        h = mixer_block_ref(h, blk)
    return mixer_head_ref(h, params["head_ln_gamma"], params["head_ln_beta"],
                          params["head_w"], params["head_b"])


# --------------------------------------------------------------------------- #
if __name__ == "__main__":
    # Small but lane-friendly shapes: dim is a multiple of 128 and num_patch a
    # multiple of 8 so mixer-block tiles are (8,128)-aligned and stores lane-dense.
    in_channels, image_size, patch_size = 3, 16, 4       # -> num_patch = 16
    dim, depth = 128, 2
    tokens_mlp_dim, channels_mlp_dim = 64, 256
    num_classes, batch = 10, 8

    key = jax.random.PRNGKey(0)
    kx, kp = jax.random.split(key)
    x = jax.random.normal(kx, (batch, in_channels, image_size, image_size), jnp.float32)
    params = init_mlp_mixer_params(kp, in_channels, dim, num_classes, patch_size,
                                   image_size, depth, tokens_mlp_dim, channels_mlp_dim)

    # Patch embedding + one mixer block in isolation ((N, B, D) internal layout).
    patches = extract_patches(x, patch_size)                     # (N, B, P)
    emb = patch_embed(patches, params["embed_w"], params["embed_b"])
    jax.block_until_ready(emb)
    emb_ref = patch_embed_ref(jnp.transpose(patches, (1, 0, 2)),
                              params["embed_w"], params["embed_b"])
    err = jnp.max(jnp.abs(jnp.transpose(emb, (1, 0, 2)).astype(jnp.float32)
                          - emb_ref.astype(jnp.float32)))
    assert emb.shape == (patches.shape[0], batch, dim)
    assert err < 2e-2, f"patch embed mismatch: {err}"

    blk = mixer_block(emb, params["blocks"][0])
    jax.block_until_ready(blk)
    blk_ref = mixer_block_ref(jnp.transpose(emb, (1, 0, 2)), params["blocks"][0])
    err = jnp.max(jnp.abs(jnp.transpose(blk, (1, 0, 2)).astype(jnp.float32)
                          - blk_ref.astype(jnp.float32)))
    assert blk.shape == emb.shape
    assert err < 3e-2, f"mixer block mismatch: {err}"

    # Full MlpMixer forward: patch embed -> depth mixer blocks -> LN/pool/head.
    logits = mlp_mixer_forward(x, params, patch_size)
    jax.block_until_ready(logits)
    ref = mlp_mixer_ref(x, params, patch_size)
    err = jnp.max(jnp.abs(logits - ref))
    assert logits.shape == (batch, num_classes)
    assert err < 5e-2, f"mlp mixer mismatch: {err}"
    print("KERNEL_OK")
</pallas_src>

<mosaic_0001>
module attributes {stable_mosaic.version = 11 : i64} {
  func.func @patch_embed_kernel(%arg0: i32, %arg1: memref<16x8x128xf32, #tpu.memory_space<vmem>>, %arg2: memref<128x128xf32, #tpu.memory_space<vmem>>, %arg3: memref<1x128xf32, #tpu.memory_space<vmem>>, %arg4: memref<16x8x128xf32, #tpu.memory_space<vmem>>) attributes {dimension_semantics = [#tpu.dimension_semantics<parallel>], iteration_bounds = array<i64: 1>, scalar_prefetch = 0 : i64, scratch_operands = 0 : i64, tpu.core_type = #tpu.core_type<tc>, window_params = [{transform_indices = @transform_0, window_bounds = array<i64: 16, 8, 128>}, {pipeline_mode = #tpu.pipeline_mode<synchronous>, transform_indices = @transform_1, window_bounds = array<i64: 128, 128>}, {pipeline_mode = #tpu.pipeline_mode<synchronous>, transform_indices = @transform_2, window_bounds = array<i64: 1, 128>}, {transform_indices = @transform_3, window_bounds = array<i64: 16, 8, 128>}]} {
    %c0 = arith.constant 0 : index
    %c0_0 = arith.constant 0 : index
    %c0_1 = arith.constant 0 : index
    %0 = vector.load %arg1[%c0, %c0_0, %c0_1] : memref<16x8x128xf32, #tpu.memory_space<vmem>>, vector<16x8x128xf32>
    %1 = vector.shape_cast %0 : vector<16x8x128xf32> to vector<128x128xf32>
    %c0_2 = arith.constant 0 : index
    %c0_3 = arith.constant 0 : index
    %2 = vector.load %arg2[%c0_2, %c0_3] : memref<128x128xf32, #tpu.memory_space<vmem>>, vector<128x128xf32>
    %cst = arith.constant dense<0.000000e+00> : vector<128x128xf32>
    %3 = tpu.matmul %1, %2, %cst {dimension_numbers = #tpu.dot_dimension_numbers<[1], [0], [0], [1], [0, 0, 1, 1], [], []>} : vector<128x128xf32>, vector<128x128xf32>, vector<128x128xf32> -> vector<128x128xf32>
    %c0_4 = arith.constant 0 : index
    %c0_5 = arith.constant 0 : index
    %4 = vector.load %arg3[%c0_4, %c0_5] : memref<1x128xf32, #tpu.memory_space<vmem>>, vector<1x128xf32>
    %5 = vector.broadcast %4 : vector<1x128xf32> to vector<128x128xf32>
    %6 = arith.addf %3, %5 : vector<128x128xf32>
    %7 = vector.shape_cast %6 : vector<128x128xf32> to vector<16x8x128xf32>
    %c0_6 = arith.constant 0 : index
    %c0_7 = arith.constant 0 : index
    %c0_8 = arith.constant 0 : index
    %8 = vector.load %arg4[%c0_6, %c0_7, %c0_8] : memref<16x8x128xf32, #tpu.memory_space<vmem>>, vector<16x8x128xf32>
    tpu.vector_store %arg4[%c0_6, %c0_7, %c0_8], %7 {strides = array<i32>} : memref<16x8x128xf32, #tpu.memory_space<vmem>>, vector<16x8x128xf32>,
    return
  }
  func.func @transform_0(%arg0: i32) -> (i32, i32, i32) {
    %c0_i32 = arith.constant 0 : i32
    %c0_i32_0 = arith.constant 0 : i32
    %c0_i32_1 = arith.constant 0 : i32
    return %c0_i32, %arg0, %c0_i32_0 : i32, i32, i32
  }
  func.func @transform_1(%arg0: i32) -> (i32, i32) {
    %c0_i32 = arith.constant 0 : i32
    %c0_i32_0 = arith.constant 0 : i32
    %c0_i32_1 = arith.constant 0 : i32
    return %c0_i32, %c0_i32_0 : i32, i32
  }
  func.func @transform_2(%arg0: i32) -> (i32, i32) {
    %c0_i32 = arith.constant 0 : i32
    %c0_i32_0 = arith.constant 0 : i32
    %c0_i32_1 = arith.constant 0 : i32
    return %c0_i32, %c0_i32_0 : i32, i32
  }
  func.func @transform_3(%arg0: i32) -> (i32, i32, i32) {
    %c0_i32 = arith.constant 0 : i32
    %c0_i32_0 = arith.constant 0 : i32
    %c0_i32_1 = arith.constant 0 : i32
    return %c0_i32, %arg0, %c0_i32_0 : i32, i32, i32
  }
}

</mosaic_0001>

<bundles_post_ra>
// kernel: tpu_custom_call.1
= control target key start
LH: loop header
LB: loop body
LE: loop exit
PB: predicated region body
PF: predicated region fallthrough
CT: control target
= control target key end

     0   :  { %8 = vsyncpa [#allocation3], 0  ;;  %s599_s0 = inlined_call_operand.hbm [shape: f32[16,8,128], index: 0, kind: input, shape index: {}]   ;;  %s600_s1 = inlined_call_operand.hbm [shape: f32[128,128], index: 1, kind: input, shape index: {}]   ;;  %s601_s2 = inlined_call_operand.hbm [shape: f32[1,128], index: 2, kind: input, shape index: {}]   ;;  %s602_s3 = inlined_call_operand.hbm [shape: f32[16,8,128], index: 3, kind: output, shape index: {}]  }
   0x1   :  { %9 = vsyncpa [#allocation6], 0 }
   0x2   :  { %10 = vsyncpa [#allocation4], 0  ;;  %s509_s12 = smov [#allocation5]   ;;  %s510_s14 = smov [#allocation2]  }
   0x3   :  { %s28_s13 = sshll.u32 %s509_s12, 4  ;;  %s16_s15 = sshll.u32 %s510_s14, 4  ;;  %s29_s13 = int_to_ptr.vmem [resolvable:$true] %s28_s13  ;;  %s535_s15 = int_to_ptr.vmem [resolvable:$true] %s16_s15 }
   0x4   :  { %s415_s18 = scalar_lea.hbm %s600_s1, 2048 }
   0x5   :  { %p416_p0 = scmp.ne.s32.totalorder %s600_s1, %s415_s18  ;;  %p419_p1 = scmp.lt.u32.totalorder %s415_s18, %s600_s1 }
   0x7   :  { %p421_p2 = pnand %p419_p1, %p416_p0 }
   0x9   :  { %424 = shalt.err (!%p421_p2)
}
   0xa   :  { %s425_s23 = scalar_lea.vmem %s29_s13, 2048  ;;  %p430_p4 = scmp.lt.s32.totalorder %s29_s13, %s29_s13 }
   0xb   :  { %p426_p3 = scmp.ne.s32.totalorder %s29_s13, %s425_s23  ;;  %p431_p5 = scmp.lt.s32.totalorder %s425_s23, %s425_s23 }
   0xd   :  { %p432_p6 = por %p431_p5, %p430_p4 }
   0xf   :  { %p433_p7 = pnand %p432_p6, %p426_p3 }
  0x11   :  { %436 = shalt.err (!%p433_p7)
}
  0x12   :  { %s511_s24 = smov 128   ;;  %s512_s25 = smov 8  }
  0x13   :  { %34 = dma.hbm_to_vmem [thread:$0]  %s600_s1, 2048, %s29_s13, [#allocation6], %s511_s24, %s511_s24, %s512_s25  }
  0x14   :  { %s437_s30 = scalar_lea.hbm %s599_s0, 2048 }
  0x15   :  { %p438_p8 = scmp.ne.s32.totalorder %s599_s0, %s437_s30  ;;  %p441_p9 = scmp.lt.u32.totalorder %s437_s30, %s599_s0 }
  0x17   :  { %p443_p10 = pnand %p441_p9, %p438_p8 }
  0x19   :  { %446 = shalt.err (!%p443_p10)
}
  0x1a   :  { %s447_s8 = scalar_lea.vmem %s535_s15, 2048  ;;  %p452_p12 = scmp.lt.s32.totalorder %s535_s15, %s535_s15 }
  0x1b   :  { %p448_p11 = scmp.ne.s32.totalorder %s535_s15, %s447_s8  ;;  %p453_p13 = scmp.lt.s32.totalorder %s447_s8, %s447_s8 }
  0x1d   :  { %p454_p0 = por %p453_p13, %p452_p12 }
  0x1f   :  { %p455_p1 = pnand %p454_p0, %p448_p11 }
  0x21   :  { %458 = shalt.err (!%p455_p1)
}
  0x22   :  { %22 = dma.hbm_to_vmem [thread:$0]  %s599_s0, 2048, %s535_s15, [#allocation3], %s511_s24, %s511_s24, %s512_s25  }
  0x23   :  { %s513_s10 = smov [#allocation7]   ;;  %s459_s14 = scalar_lea.hbm %s601_s2, 16 }
  0x24   :  { %s41_s11 = sshll.u32 %s513_s10, 4  ;;  %p460_p2 = scmp.ne.s32.totalorder %s601_s2, %s459_s14  ;;  %s42_s11 = int_to_ptr.vmem [resolvable:$true] %s41_s11 }
  0x25   :  { %p463_p3 = scmp.lt.u32.totalorder %s459_s14, %s601_s2 }
  0x27   :  { %p465_p4 = pnand %p463_p3, %p460_p2 }
  0x29   :  { %468 = shalt.err (!%p465_p4)
}
  0x2a   :  { %s469_s20 = scalar_lea.vmem %s42_s11, 16  ;;  %s473_s0 = scalar_lea.vmem %s42_s11, 32 }
  0x2b   :  { %p470_p5 = scmp.ne.s32.totalorder %s42_s11, %s469_s20  ;;  %p474_p6 = scmp.lt.s32.totalorder %s42_s11, %s42_s11 }
  0x2c   :  { %p475_p7 = scmp.lt.s32.totalorder %s473_s0, %s469_s20 }
  0x2e   :  { %p476_p8 = por %p475_p7, %p474_p6 }
  0x30   :  { %p477_p9 = pnand %p476_p8, %p470_p5 }
  0x32   :  { %480 = shalt.err (!%p477_p9)
}
  0x33   :  { %44 = dma.hbm_to_vmem [thread:$0]  %s601_s2, 16, %s42_s11, [#allocation6]  }
  0x34   :  { %503 = dma.done.wait [#allocation3], 2048  }
  0x35   :  { %504 = vsyncadd [#allocation3], 4294965248 }
  0x36   :  { %505 = dma.done.wait [#allocation6], 2064  }
  0x37   :  { %506 = vsyncadd [#allocation6], 4294965232  ;;  %v70_v0 = vld [vmem:[#allocation5] sm:$0xff]  ;;  %v71_v1 = vld [vmem:[#allocation5 + $0x8] sm:$0xff]  ;;  %s514_s2 = smov [#allocation8]  }
  0x38   :  { %v72_v2 = vld [vmem:[#allocation5 + $0x10] sm:$0xff]  ;;  %v361_v3 = vpack.c.bf16 %v71_v1, %v70_v0  ;;  %v73_v4 = vld [vmem:[#allocation5 + $0x18] sm:$0xff]  ;;  %v74_v6 = vld [vmem:[#allocation5 + $0x20] sm:$0xff]  ;;  %s259_s22 = sshll.u32 %s514_s2, 4  ;;  %s260_s22 = int_to_ptr.vmem [resolvable:$true] %s259_s22 }
  0x39   :  { %v365_v5 = vpack.c.bf16 %v73_v4, %v72_v2  ;;  %v75_v7 = vld [vmem:[#allocation5 + $0x28] sm:$0xff]  ;;  %v54_v9 = vld [vmem:[#allocation2] sm:$0xff]  ;;  %v76_v11 = vld [vmem:[#allocation5 + $0x30] sm:$0xff]  ;;  %s481_s23 = scalar_lea.vmem %s260_s22, 2048  ;;  %p486_p11 = scmp.lt.s32.totalorder %s260_s22, %s260_s22 }
  0x3a   :  { %362 = vmatprep.subr.bf16.mxu0 %v361_v3  ;;  %393 = vmatprep.subr.bf16.mxu1 %v361_v3  ;;  %v369_v8 = vpack.c.bf16 %v75_v7, %v74_v6  ;;  %v62_v10 = vld [vmem:[#allocation2 + $0x40] sm:$0xff]  ;;  %v77_v12 = vld [vmem:[#allocation5 + $0x38] sm:$0xff]  ;;  %v79_v15 = vld [vmem:[#allocation5 + $0x48] sm:$0xff]  ;;  %p482_p10 = scmp.ne.s32.totalorder %s260_s22, %s481_s23  ;;  %p487_p12 = scmp.lt.s32.totalorder %s481_s23, %s481_s23 }
  0x3b   :  { %364 = vmatpush3.bf16.msra.mxu0 %v361_v3  ;;  %401 = vmatpush3.bf16.msra.mxu1 %v361_v3  ;;  %v373_v13 = vpack.c.bf16 %v77_v12, %v76_v11  ;;  %v78_v14 = vld [vmem:[#allocation5 + $0x40] sm:$0xff]  ;;  %v80_v17 = vld [vmem:[#allocation5 + $0x50] sm:$0xff]  ;;  %v81_v18 = vld [vmem:[#allocation5 + $0x58] sm:$0xff] }
  0x3c   :  { %366 = vmatprep.subr.bf16.mxu0 %v365_v5  ;;  %394 = vmatprep.subr.bf16.mxu1 %v365_v5  ;;  %v377_v16 = vpack.c.bf16 %v79_v15, %v78_v14  ;;  %v381_v19 = vpack.c.bf16 %v81_v18, %v80_v17  ;;  %v82_v20 = vld [vmem:[#allocation5 + $0x60] sm:$0xff]  ;;  %v83_v21 = vld [vmem:[#allocation5 + $0x68] sm:$0xff]  ;;  %v84_v23 = vld [vmem:[#allocation5 + $0x70] sm:$0xff]  ;;  %p488_p13 = por %p487_p12, %p486_p11 }
  0x3d   :  { %337 = vmatprep.mubr.f32.mxu0 %v54_v9  ;;  %349 = vmatprep.mubr.f32.mxu1 %v62_v10  ;;  %v385_v22 = vpack.c.bf16 %v83_v21, %v82_v20  ;;  %v85_v24 = vld [vmem:[#allocation5 + $0x78] sm:$0xff]  ;;  %v55_v26 = vld [vmem:[#allocation2 + $0x8] sm:$0xff]  ;;  %v56_v28 = vld [vmem:[#allocation2 + $0x10] sm:$0xff] }
  0x3e   :  { %v389_v25 = vpack.c.bf16 %v85_v24, %v84_v23  ;;  %v63_v27 = vld [vmem:[#allocation2 + $0x48] sm:$0xff]  ;;  %v64_v29 = vld [vmem:[#allocation2 + $0x50] sm:$0xff]  ;;  %v57_v30 = vld [vmem:[#allocation2 + $0x18] sm:$0xff]  ;;  %p489_p0 = pnand %p488_p13, %p482_p10 }
  0x3f   :  { %368 = vmatpush3.bf16.msra.mxu0 %v365_v5  ;;  %402 = vmatpush3.bf16.msra.mxu1 %v365_v5  ;;  %v65_v31 = vld [vmem:[#allocation2 + $0x58] sm:$0xff]  ;;  %v58_v32 = vld [vmem:[#allocation2 + $0x20] sm:$0xff]  ;;  %v59_v34 = vld [vmem:[#allocation2 + $0x28] sm:$0xff] }
  0x40   :  { %370 = vmatprep.subr.bf16.mxu0 %v369_v8  ;;  %395 = vmatprep.subr.bf16.mxu1 %v369_v8  ;;  %v66_v33 = vld [vmem:[#allocation2 + $0x60] sm:$0xff]  ;;  %v67_v35 = vld [vmem:[#allocation2 + $0x68] sm:$0xff]  ;;  %v60_v36 = vld [vmem:[#allocation2 + $0x30] sm:$0xff] }
  0x41   :  { %v68_v37 = vld [vmem:[#allocation2 + $0x70] sm:$0xff]  ;;  %v61_v38 = vld [vmem:[#allocation2 + $0x38] sm:$0xff]  ;;  %v272_v40 = vld [vmem:[#allocation7] ss:$0 sm:$0xff] }
  0x42   :  { %v69_v39 = vld [vmem:[#allocation2 + $0x78] sm:$0xff] }
  0x43   :  { %372 = vmatpush3.bf16.msra.mxu0 %v369_v8  ;;  %403 = vmatpush3.bf16.msra.mxu1 %v369_v8 }
  0x44   :  { %374 = vmatprep.subr.bf16.mxu0 %v373_v13  ;;  %396 = vmatprep.subr.bf16.mxu1 %v373_v13 }
  0x47   :  { %376 = vmatpush3.bf16.msra.mxu0 %v373_v13  ;;  %404 = vmatpush3.bf16.msra.mxu1 %v373_v13 }
  0x48   :  { %378 = vmatprep.subr.bf16.mxu0 %v377_v16  ;;  %397 = vmatprep.subr.bf16.mxu1 %v377_v16 }
  0x4b   :  { %380 = vmatpush3.bf16.msra.mxu0 %v377_v16  ;;  %405 = vmatpush3.bf16.msra.mxu1 %v377_v16 }
  0x4c   :  { %382 = vmatprep.subr.bf16.mxu0 %v381_v19  ;;  %398 = vmatprep.subr.bf16.mxu1 %v381_v19 }
  0x4f   :  { %384 = vmatpush3.bf16.msra.mxu0 %v381_v19  ;;  %406 = vmatpush3.bf16.msra.mxu1 %v381_v19 }
  0x50   :  { %386 = vmatprep.subr.bf16.mxu0 %v385_v22  ;;  %399 = vmatprep.subr.bf16.mxu1 %v385_v22 }
  0x53   :  { %388 = vmatpush3.bf16.msra.mxu0 %v385_v22  ;;  %407 = vmatpush3.bf16.msra.mxu1 %v385_v22 }
  0x54   :  { %390 = vmatprep.subr.bf16.mxu0 %v389_v25  ;;  %400 = vmatprep.subr.bf16.mxu1 %v389_v25 }
  0x57   :  { %392 = vmatpush3.bf16.msra.mxu0 %v389_v25  ;;  %408 = vmatpush3.bf16.msra.mxu1 %v389_v25 }
  0x5a   :  { %338 = vmatmul.mubr.f32.vlgmr.msra.gmra.mrb[0].mxu0 %v55_v26  ;;  %350 = vmatmul.mubr.f32.vlgmr.msra.gmra.mrb[0].mxu1 %v63_v27 }
  0x5b   :  { %340 = vmatprep.mubr.f32.mxu0 %v56_v28  ;;  %352 = vmatprep.mubr.f32.mxu1 %v64_v29 }
  0x5e   :  { %341 = vmatmul.mubr.f32.gmra.mrb[2].mxu0 %v57_v30  ;;  %353 = vmatmul.mubr.f32.gmra.mrb[2].mxu1 %v65_v31 }
  0x5f   :  { %343 = vmatprep.mubr.f32.mxu0 %v58_v32  ;;  %355 = vmatprep.mubr.f32.mxu1 %v66_v33 }
  0x62   :  { %344 = vmatmul.mubr.f32.gmra.mrb[4].mxu0 %v59_v34  ;;  %356 = vmatmul.mubr.f32.gmra.mrb[4].mxu1 %v67_v35 }
  0x63   :  { %346 = vmatprep.mubr.f32.mxu0 %v60_v36  ;;  %358 = vmatprep.mubr.f32.mxu1 %v68_v37 }
  0x66   :  { %347 = vmatmul.mubr.f32.gmra.mrb[6].mxu0 %v61_v38  ;;  %359 = vmatmul.mubr.f32.gmra.mrb[6].mxu1 %v69_v39 }
 0x12d   :  { %v339_v41 = vpop.f32.mrb[0].mxu0  ;;  %v351_v42 = vpop.f32.mrb[0].mxu1 }
 0x12e   :  { %v165_v43 = vadd.f32 %v339_v41, %v272_v40  ;;  %v205_v44 = vadd.f32 %v351_v42, %v272_v40  ;;  %v159_v45 = vpop.f32.mrb[1].mxu0  ;;  %v199_v46 = vpop.f32.mrb[1].mxu1 }
 0x12f   :  { %v160_v47 = vadd.f32 %v272_v40, %v159_v45  ;;  %v200_v48 = vadd.f32 %v272_v40, %v199_v46 }
 0x130   :  { %239 = vst [vmem:[#allocation8 + $0x8] sm:$0xff] %v165_v43  ;;  %247 = vst [vmem:[#allocation8 + $0x48] sm:$0xff] %v205_v44 }
 0x131   :  { %238 = vst [vmem:[#allocation8] sm:$0xff] %v160_v47  ;;  %246 = vst [vmem:[#allocation8 + $0x40] sm:$0xff] %v200_v48  ;;  %v342_v49 = vpop.f32.mrb[2].mxu0  ;;  %v354_v50 = vpop.f32.mrb[2].mxu1 }
 0x132   :  { %v175_v51 = vadd.f32 %v342_v49, %v272_v40  ;;  %v215_v52 = vadd.f32 %v354_v50, %v272_v40  ;;  %v169_v53 = vpop.f32.mrb[3].mxu0  ;;  %v209_v54 = vpop.f32.mrb[3].mxu1 }
 0x133   :  { %v170_v55 = vadd.f32 %v272_v40, %v169_v53  ;;  %v210_v56 = vadd.f32 %v272_v40, %v209_v54 }
 0x134   :  { %241 = vst [vmem:[#allocation8 + $0x18] sm:$0xff] %v175_v51  ;;  %249 = vst [vmem:[#allocation8 + $0x58] sm:$0xff] %v215_v52 }
 0x135   :  { %240 = vst [vmem:[#allocation8 + $0x10] sm:$0xff] %v170_v55  ;;  %248 = vst [vmem:[#allocation8 + $0x50] sm:$0xff] %v210_v56  ;;  %v345_v57 = vpop.f32.mrb[4].mxu0  ;;  %v357_v58 = vpop.f32.mrb[4].mxu1 }
 0x136   :  { %v185_v59 = vadd.f32 %v345_v57, %v272_v40  ;;  %v225_v60 = vadd.f32 %v357_v58, %v272_v40  ;;  %v179_v61 = vpop.f32.mrb[5].mxu0  ;;  %v219_v62 = vpop.f32.mrb[5].mxu1 }
 0x137   :  { %v180_v63 = vadd.f32 %v272_v40, %v179_v61  ;;  %v220_v0 = vadd.f32 %v272_v40, %v219_v62 }
 0x138   :  { %243 = vst [vmem:[#allocation8 + $0x28] sm:$0xff] %v185_v59  ;;  %251 = vst [vmem:[#allocation8 + $0x68] sm:$0xff] %v225_v60 }
 0x139   :  { %242 = vst [vmem:[#allocation8 + $0x20] sm:$0xff] %v180_v63  ;;  %250 = vst [vmem:[#allocation8 + $0x60] sm:$0xff] %v220_v0  ;;  %v348_v1 = vpop.f32.mrb[6].mxu0  ;;  %v360_v2 = vpop.f32.mrb[6].mxu1 }
 0x13a   :  { %v195_v3 = vadd.f32 %v348_v1, %v272_v40  ;;  %v235_v4 = vadd.f32 %v360_v2, %v272_v40  ;;  %v189_v5 = vpop.f32.mrb[7].mxu0  ;;  %v229_v6 = vpop.f32.mrb[7].mxu1 }
 0x13b   :  { %v190_v7 = vadd.f32 %v272_v40, %v189_v5  ;;  %v230_v8 = vadd.f32 %v272_v40, %v229_v6 }
 0x13c   :  { %245 = vst [vmem:[#allocation8 + $0x38] sm:$0xff] %v195_v3  ;;  %253 = vst [vmem:[#allocation8 + $0x78] sm:$0xff] %v235_v4 }
 0x13d   :  { %244 = vst [vmem:[#allocation8 + $0x30] sm:$0xff] %v190_v7  ;;  %252 = vst [vmem:[#allocation8 + $0x70] sm:$0xff] %v230_v8 }
 0x13e   :  { %492 = shalt.err (!%p489_p0)
}
 0x13f   :  { %s493_s28 = scalar_lea.hbm %s602_s3, 2048 }
 0x140   :  { %p494_p1 = scmp.ne.s32.totalorder %s602_s3, %s493_s28  ;;  %p497_p2 = scmp.lt.u32.totalorder %s493_s28, %s602_s3 }
 0x142   :  { %p499_p3 = pnand %p497_p2, %p494_p1 }
 0x144   :  { %502 = shalt.err (!%p499_p3)
}
 0x145   :  { %265 = dma.vmem_to_hbm [thread:$0]  %s260_s22, 2048, %s602_s3, [#allocation4], %s511_s24, %s511_s24, %s512_s25  }
 0x146   :  { %507 = dma.done.wait [#allocation4], 2048  }
 0x147   :  { %508 = vsyncadd [#allocation4], 4294965248 }
 0x148   :  { %269 = vsyncpa [#allocation3], 1 }
 0x149   :  { %270 = vsyncpa [#allocation6], 1 }
 0x14a   :  { %271 = vsyncpa [#allocation4], 1 }

</bundles_post_ra>
